<compile_context>
chip_gen: v5e
topology: v5e:2x2
jax: 0.10.0
libtpu: 0.0.40
codegen_flags: <defaults>
</compile_context>

<pallas_src>
import jax
import jax.numpy as jnp
from jax.experimental import pallas as pl
from jax.experimental.pallas import tpu as pltpu


def _mlp_kernel(x_ref, w1_ref, b1_ref, w2_ref, b2_ref, o_ref):
    # Layer 1: [bm, D_in] @ [D_in, H] -> [bm, H].  Cast x to the weight dtype so
    # the MXU stays on the fast bf16 path when weights are bf16; accumulate f32.
    x = x_ref[...].astype(w1_ref.dtype)
    h = jnp.dot(x, w1_ref[...], preferred_element_type=jnp.float32)
    h = jnp.tanh(h + b1_ref[...].astype(jnp.float32))          # EUP tanh, free slot
    # Layer 2: [bm, H] @ [H, D_out] -> [bm, D_out], f32 accumulate.
    o = jnp.dot(h.astype(w2_ref.dtype), w2_ref[...],
                preferred_element_type=jnp.float32)
    o = jnp.tanh(o + b2_ref[...].astype(jnp.float32))
    # TODO(synk): when D_out < 128, fold groups of 8 batch rows into the lane
    # axis (present out as [B/8, 8*D_out]) for unmasked lane-dense stores; this
    # needs an in-kernel sublane->lane reshape and is left out for lowering safety.
    o_ref[...] = o.astype(o_ref.dtype)


_MAX_BLOCK_B = 512                          # ~85% of HBM roofline at 512-row tiles
_VMEM_RESIDENT_BUDGET = 48 * 1024 * 1024    # stay under v7x's 64 MiB per-TC VMEM


def _round_up(n, m):
    return ((n + m - 1) // m) * m


def _pick_block_b(batch, requested=None):
    """Batch-tile size: multiple of 8, capped at 512, >=2 tiles for medium batches."""
    if requested is not None:
        return max(8, _round_up(min(requested, batch), 8))
    if batch <= 8:
        return 8
    if batch <= 2 * _MAX_BLOCK_B:
        # >=2 grid steps lets the "parallel" batch axis use both v7x TensorCores.
        return _round_up(pl.cdiv(batch, 2), 8)
    return _MAX_BLOCK_B


def mlp_forward(x, w1, b1, w2, b2, *, block_b=None, compute_dtype=None,
                single_buffer_weights=False):
    """Fused 2-layer MLP with tanh activations.

    x : [B, D_in]
    w1: [D_in, H]   (torch linear_1.weight.T)
    b1: [H]
    w2: [H, D_out]  (torch linear_2.weight.T)
    b2: [D_out]
    compute_dtype: optional MXU dtype for the weights (e.g. jnp.bfloat16);
                   accumulation stays f32, output stays x.dtype.
    returns [B, D_out]
    """
    B, D_in = x.shape
    D_in_w, H = w1.shape
    H_w, D_out = w2.shape
    assert D_in_w == D_in and H_w == H
    assert b1.shape == (H,) and b2.shape == (D_out,)

    out_dtype = x.dtype

    if compute_dtype is not None:
        w1 = w1.astype(compute_dtype)
        w2 = w2.astype(compute_dtype)

    # Biases as [1, F] lane-dense 2-D blocks.
    b1_2d = b1.reshape(1, H)
    b2_2d = b2.reshape(1, D_out)

    # Batch tiling; pad instead of falling back to one whole-batch tile.
    bb = _pick_block_b(B, block_b)
    B_pad = _round_up(B, bb)
    if B_pad != B:
        x = jnp.pad(x, ((0, B_pad - B), (0, 0)))   # dead rows, sliced off below
    grid = (B_pad // bb,)

    # ---- VMEM budgeting -------------------------------------------------
    def _nbytes(a):
        return int(a.size) * a.dtype.itemsize

    n_weight_bufs = 1 if single_buffer_weights else 2
    resident = _nbytes(w1) + _nbytes(w2) + _nbytes(b1_2d) + _nbytes(b2_2d)
    streamed = 2 * (bb * D_in * x.dtype.itemsize + bb * D_out * out_dtype.itemsize)
    scratch = bb * (H + D_out) * 4                  # f32 intermediates
    vmem_needed = n_weight_bufs * resident + streamed + scratch
    if vmem_needed > _VMEM_RESIDENT_BUDGET:
        # TODO(synk): add a K/N-tiled path ("arbitrary" grid axes + f32
        # accumulator scratch, init/finalize via pl.when) for hidden sizes
        # whose weights do not fit resident in VMEM.
        raise ValueError(
            f"resident-weight MLP kernel needs ~{vmem_needed >> 20} MiB VMEM; "
            "reduce H/D_in/D_out (or add a K/N-tiled path)")
    vmem_limit = int(min(64 * 1024 * 1024, max(32 * 1024 * 1024, 2 * vmem_needed)))

    weight_kwargs = {}
    if single_buffer_weights:
        # Grid-invariant blocks don't need double-buffering; halving their VMEM
        # footprint buys headroom on v7x's 64 MiB per-TC VMEM.
        weight_kwargs = dict(pipeline_mode=pl.Buffered(1))

    out = pl.pallas_call(
        _mlp_kernel,
        out_shape=jax.ShapeDtypeStruct((B_pad, D_out), out_dtype),
        grid=grid,
        in_specs=[
            pl.BlockSpec((bb, D_in), lambda i: (i, 0)),                    # x tile
            pl.BlockSpec((D_in, H), lambda i: (0, 0), **weight_kwargs),    # W1 (resident)
            pl.BlockSpec((1, H), lambda i: (0, 0), **weight_kwargs),       # b1
            pl.BlockSpec((H, D_out), lambda i: (0, 0), **weight_kwargs),   # W2 (resident)
            pl.BlockSpec((1, D_out), lambda i: (0, 0), **weight_kwargs),   # b2
        ],
        out_specs=pl.BlockSpec((bb, D_out), lambda i: (i, 0)),
        compiler_params=pltpu.CompilerParams(
            dimension_semantics=("parallel",),
            vmem_limit_bytes=vmem_limit,
        ),
    )(x, w1, b1_2d, w2, b2_2d)

    return out[:B] if B_pad != B else out


if __name__ == "__main__":
    key = jax.random.PRNGKey(0)
    k_x, k_w1, k_b1, k_w2, k_b2, k_x2 = jax.random.split(key, 6)

    dim_in, num_hidden, dim_out = 32, 64, 16

    # Parameters stored pre-transposed to [in, out] (torch keeps [out, in]).
    w1 = jax.random.normal(k_w1, (dim_in, num_hidden), dtype=jnp.float32) * 0.1
    b1 = jax.random.normal(k_b1, (num_hidden,), dtype=jnp.float32) * 0.1
    w2 = jax.random.normal(k_w2, (num_hidden, dim_out), dtype=jnp.float32) * 0.1
    b2 = jax.random.normal(k_b2, (dim_out,), dtype=jnp.float32) * 0.1

    def ref_mlp(xv):
        return jnp.tanh(jnp.tanh(xv @ w1 + b1) @ w2 + b2)

    # 1) Small batch, f32 weights (matches the PyTorch module at demo size).
    x_small = jax.random.normal(k_x, (8, dim_in), dtype=jnp.float32)
    out_small = jax.block_until_ready(mlp_forward(x_small, w1, b1, w2, b2))
    assert out_small.shape == (8, dim_out), out_small.shape
    assert jnp.allclose(out_small, ref_mlp(x_small), rtol=1e-5, atol=1e-4), \
        "f32 small-batch mismatch vs reference"

    # 2) Non-multiple batch -> exercises padding + >=2 parallel grid steps.
    x_big = jax.random.normal(k_x2, (100, dim_in), dtype=jnp.float32)
    out_big = jax.block_until_ready(mlp_forward(x_big, w1, b1, w2, b2))
    assert out_big.shape == (100, dim_out), out_big.shape
    assert jnp.allclose(out_big, ref_mlp(x_big), rtol=1e-5, atol=1e-4), \
        "f32 padded-batch mismatch vs reference"

    # 3) bf16 MXU path (weights shipped as bf16, f32 accumulation) — looser
    #    tolerance because activations/weights are rounded to bf16.
    out_bf16 = jax.block_until_ready(
        mlp_forward(x_small, w1, b1, w2, b2, compute_dtype=jnp.bfloat16))
    assert jnp.allclose(out_bf16, ref_mlp(x_small), rtol=5e-2, atol=5e-2), \
        "bf16 path mismatch vs reference"

    print("KERNEL_OK")
</pallas_src>

<mosaic_0001>
module attributes {stable_mosaic.version = 11 : i64} {
  func.func @_mlp_kernel(%arg0: i32, %arg1: memref<8x32xf32, #tpu.memory_space<vmem>>, %arg2: memref<32x64xf32, #tpu.memory_space<vmem>>, %arg3: memref<1x64xf32, #tpu.memory_space<vmem>>, %arg4: memref<64x16xf32, #tpu.memory_space<vmem>>, %arg5: memref<1x16xf32, #tpu.memory_space<vmem>>, %arg6: memref<8x16xf32, #tpu.memory_space<vmem>>) attributes {dimension_semantics = [#tpu.dimension_semantics<parallel>], iteration_bounds = array<i64: 1>, scalar_prefetch = 0 : i64, scratch_operands = 0 : i64, tpu.core_type = #tpu.core_type<tc>, window_params = [{transform_indices = @transform_0, window_bounds = array<i64: 8, 32>}, {pipeline_mode = #tpu.pipeline_mode<synchronous>, transform_indices = @transform_1, window_bounds = array<i64: 32, 64>}, {pipeline_mode = #tpu.pipeline_mode<synchronous>, transform_indices = @transform_2, window_bounds = array<i64: 1, 64>}, {pipeline_mode = #tpu.pipeline_mode<synchronous>, transform_indices = @transform_3, window_bounds = array<i64: 64, 16>}, {pipeline_mode = #tpu.pipeline_mode<synchronous>, transform_indices = @transform_4, window_bounds = array<i64: 1, 16>}, {transform_indices = @transform_5, window_bounds = array<i64: 8, 16>}]} {
    %c0 = arith.constant 0 : index
    %c0_0 = arith.constant 0 : index
    %0 = vector.load %arg1[%c0, %c0_0] : memref<8x32xf32, #tpu.memory_space<vmem>>, vector<8x32xf32>
    %c0_1 = arith.constant 0 : index
    %c0_2 = arith.constant 0 : index
    %1 = vector.load %arg2[%c0_1, %c0_2] : memref<32x64xf32, #tpu.memory_space<vmem>>, vector<32x64xf32>
    %cst = arith.constant dense<0.000000e+00> : vector<8x64xf32>
    %2 = tpu.matmul %0, %1, %cst {dimension_numbers = #tpu.dot_dimension_numbers<[1], [0], [0], [1], [0, 0, 1, 1], [], []>} : vector<8x32xf32>, vector<32x64xf32>, vector<8x64xf32> -> vector<8x64xf32>
    %c0_3 = arith.constant 0 : index
    %c0_4 = arith.constant 0 : index
    %3 = vector.load %arg3[%c0_3, %c0_4] : memref<1x64xf32, #tpu.memory_space<vmem>>, vector<1x64xf32>
    %4 = vector.broadcast %3 : vector<1x64xf32> to vector<8x64xf32>
    %5 = arith.addf %2, %4 : vector<8x64xf32>
    %6 = math.tanh %5 : vector<8x64xf32>
    %c0_5 = arith.constant 0 : index
    %c0_6 = arith.constant 0 : index
    %7 = vector.load %arg4[%c0_5, %c0_6] : memref<64x16xf32, #tpu.memory_space<vmem>>, vector<64x16xf32>
    %cst_7 = arith.constant dense<0.000000e+00> : vector<8x16xf32>
    %8 = tpu.matmul %6, %7, %cst_7 {dimension_numbers = #tpu.dot_dimension_numbers<[1], [0], [0], [1], [0, 0, 1, 1], [], []>} : vector<8x64xf32>, vector<64x16xf32>, vector<8x16xf32> -> vector<8x16xf32>
    %c0_8 = arith.constant 0 : index
    %c0_9 = arith.constant 0 : index
    %9 = vector.load %arg5[%c0_8, %c0_9] : memref<1x16xf32, #tpu.memory_space<vmem>>, vector<1x16xf32>
    %10 = vector.broadcast %9 : vector<1x16xf32> to vector<8x16xf32>
    %11 = arith.addf %8, %10 : vector<8x16xf32>
    %12 = math.tanh %11 : vector<8x16xf32>
    %c0_10 = arith.constant 0 : index
    %c0_11 = arith.constant 0 : index
    %13 = vector.load %arg6[%c0_10, %c0_11] : memref<8x16xf32, #tpu.memory_space<vmem>>, vector<8x16xf32>
    tpu.vector_store %arg6[%c0_10, %c0_11], %12 {strides = array<i32>} : memref<8x16xf32, #tpu.memory_space<vmem>>, vector<8x16xf32>,
    return
  }
  func.func @transform_0(%arg0: i32) -> (i32, i32) {
    %c0_i32 = arith.constant 0 : i32
    %c0_i32_0 = arith.constant 0 : i32
    return %arg0, %c0_i32 : i32, i32
  }
  func.func @transform_1(%arg0: i32) -> (i32, i32) {
    %c0_i32 = arith.constant 0 : i32
    %c0_i32_0 = arith.constant 0 : i32
    %c0_i32_1 = arith.constant 0 : i32
    return %c0_i32, %c0_i32_0 : i32, i32
  }
  func.func @transform_2(%arg0: i32) -> (i32, i32) {
    %c0_i32 = arith.constant 0 : i32
    %c0_i32_0 = arith.constant 0 : i32
    %c0_i32_1 = arith.constant 0 : i32
    return %c0_i32, %c0_i32_0 : i32, i32
  }
  func.func @transform_3(%arg0: i32) -> (i32, i32) {
    %c0_i32 = arith.constant 0 : i32
    %c0_i32_0 = arith.constant 0 : i32
    %c0_i32_1 = arith.constant 0 : i32
    return %c0_i32, %c0_i32_0 : i32, i32
  }
  func.func @transform_4(%arg0: i32) -> (i32, i32) {
    %c0_i32 = arith.constant 0 : i32
    %c0_i32_0 = arith.constant 0 : i32
    %c0_i32_1 = arith.constant 0 : i32
    return %c0_i32, %c0_i32_0 : i32, i32
  }
  func.func @transform_5(%arg0: i32) -> (i32, i32) {
    %c0_i32 = arith.constant 0 : i32
    %c0_i32_0 = arith.constant 0 : i32
    return %arg0, %c0_i32 : i32, i32
  }
}

</mosaic_0001>

<bundles_post_ra>
// kernel: tpu_custom_call.1
= control target key start
LH: loop header
LB: loop body
LE: loop exit
PB: predicated region body
PF: predicated region fallthrough
CT: control target
= control target key end

     0   :  { %s224_s0 = inlined_call_operand.vmem [shape: f32[8,32], index: 0, kind: input, shape index: {}]   ;;  %s225_s1 = inlined_call_operand.vmem [shape: f32[32,64], index: 1, kind: input, shape index: {}]   ;;  %s226_s2 = inlined_call_operand.vmem [shape: f32[1,64], index: 2, kind: input, shape index: {}]   ;;  %s227_s3 = inlined_call_operand.vmem [shape: f32[64,16], index: 3, kind: input, shape index: {}]   ;;  %s228_s4 = inlined_call_operand.vmem [shape: f32[1,16], index: 4, kind: input, shape index: {}]   ;;  %s229_s5 = inlined_call_operand.hbm [shape: f32[8,16], index: 5, kind: output, shape index: {}]  }
   0x1   :  { %v25_v0 = vld [vmem:[%s225_s1 + $0x18] sm:$0xff]  ;;  %v24_v1 = vld [vmem:[%s225_s1 + $0x10] sm:$0xff]  ;;  %v23_v3 = vld [vmem:[%s225_s1 + $0x8] sm:$0xff] }
   0x2   :  { %46 = vmatpush.msra.mxu0 %v25_v0  ;;  %v62_v2 = vld [vmem:[%s227_s3 + $0x38] sm:$0xff]  ;;  %v61_v4 = vld [vmem:[%s227_s3 + $0x30] sm:$0xff]  ;;  %v60_v5 = vld [vmem:[%s227_s3 + $0x28] sm:$0xff] }
   0x3   :  { %79 = vmatpush.msra.mxu1 %v62_v2 }
   0x4   :  { %47 = vmatpush.msra.mxu0 %v24_v1 }
   0x5   :  { %10 = vsyncpa [#allocation3], 0  ;;  %v22_v6 = vld [vmem:[%s225_s1] sm:$0xff]  ;;  %80 = vmatpush.msra.mxu1 %v61_v4  ;;  %vm30_vm0 = vcmask 261120   ;;  %v58_v9 = vld [vmem:[%s227_s3 + $0x18] sm:$0xff]  ;;  %vm67_vm1 = vcmask 523264  }
   0x6   :  { %48 = vmatpush.msra.mxu0 %v23_v3  ;;  %v21_v7 = vld [vmem:[%s224_s0] sm:$0xff]  ;;  %v57_v10 = vld [vmem:[%s227_s3 + $0x10] sm:$0xff]  ;;  %v56_v11 = vld [vmem:[%s227_s3 + $0x8] sm:$0xff]  ;;  %s101_s24 = sshll.u32 %s229_s5, 4  ;;  %vm92_vm2 = vcmask 130048   ;;  %s102_s24 = int_to_ptr.hbm [resolvable:$true] %s101_s24 }
   0x7   :  { %81 = vmatpush.msra.mxu1 %v60_v5  ;;  %v59_v8 = vld [vmem:[%s227_s3 + $0x20] sm:$0xff] }
   0x8   :  { %49 = vmatpush.msra.mxu0 %v22_v6  ;;  %v55_v12 = vld [vmem:[%s227_s3] sm:$0xff]  ;;  %s145_s3 = smov [#allocation2]  }
   0x9   :  { %110 = vmatmul.msk.f32.vlgmr.msra.gmra.mxu0 %vm30_vm0, %v21_v7  ;;  %82 = vmatpush.msra.mxu1 %v59_v8  ;;  %v113_v13 = vld [vmem:[%s226_s2] ss:$0 sm:$0xff]  ;;  %s99_s21 = sshll.u32 %s145_s3, 4  ;;  %s100_s21 = int_to_ptr.vmem [resolvable:$true] %s99_s21 }
   0xa   :  { %v114_v17 = vld [vmem:[%s228_s4] ss:$0 sm:$0xff] }
   0xb   :  { %83 = vmatpush.msra.mxu1 %v58_v9 }
   0xd   :  { %84 = vmatpush.msra.mxu1 %v57_v10 }
   0xf   :  { %85 = vmatpush.msra.mxu1 %v56_v11 }
  0x11   :  { %86 = vmatpush.msra.mxu1 %v55_v12 }
  0x86   :  { %v51_v14 = vpop.f32.mrf.mxu0 }
  0x87   :  { %v52_v15 = vadd.f32 %v113_v13, %v51_v14 }
  0x89   :  { %115 = vtanh.f32 %v52_v15 }
  0x8f   :  { %v116_v16 = vpop.eup %115 }
  0x90   :  { %111 = vmatmul.msk.f32.vlgmr.msra.gmra.mxu1 %vm67_vm1, %v116_v16 }
 0x10d   :  { %v88_v18 = vpop.f32.mrf.mxu1 }
 0x10e   :  { %v89_v19 = vadd.f32 %v114_v17, %v88_v18 }
 0x110   :  { %117 = vtanh.f32 %v89_v19 }
 0x116   :  { %v118_v20 = vpop.eup %117 }
 0x117   :  { %93 = vst.msk [vmem:[#allocation2] sm:$0xff] %vm92_vm2, %v118_v20 }
 0x118   :  { %104 = dma.vmem_to_hbm [thread:$0]  %s100_s21, 128, %s102_s24, [#allocation3]  }
 0x119   :  { %143 = dma.done.wait [#allocation3], 128  }
 0x11a   :  { %144 = vsyncadd [#allocation3], 4294967168 }
 0x11b   :  { %109 = vsyncpa [#allocation3], 1 }

</bundles_post_ra>
